<compile_context>
chip_gen: v6e
topology: v6e:2x2x1
jax: 0.10.0
libtpu: 0.0.40
codegen_flags: <defaults>
</compile_context>

<pallas_src>
import functools

import numpy as np
import jax
import jax.numpy as jnp
from jax.experimental import pallas as pl
from jax.experimental.pallas import tpu as pltpu


ALPHA = 1.0
BETA = 10.0
OHEM_RATIO = 3


# ----------------------------------------------------------------------------
# Pallas kernel: spatially tiled masked BCE (x2) + masked L1 partial sums/counts
# ----------------------------------------------------------------------------
def _dbloss_kernel(outputs_ref, gt_shrink_ref, gt_thresh_ref,
                   thr_shrink_ref, thr_binary_ref, out_ref):
    b = pl.program_id(0)
    h = pl.program_id(1)

    @pl.when(h == 0)
    def _init():
        out_ref[...] = jnp.zeros_like(out_ref)

    # Up-cast inside the kernel (inputs may be bf16 etc.); accumulate in f32.
    shrink = outputs_ref[0, 0].astype(jnp.float32)      # (TH, W) probabilities
    thresh = outputs_ref[0, 1].astype(jnp.float32)      # (TH, W)
    logits = outputs_ref[0, 2].astype(jnp.float32)      # (TH, W) raw logits
    gt_s = gt_shrink_ref[0].astype(jnp.float32)
    gt_t = gt_thresh_ref[0].astype(jnp.float32)

    pos = gt_s > 0.5
    thr_s = thr_shrink_ref[b]   # SMEM scalar, probability scale (-inf => keep all)
    thr_b = thr_binary_ref[b]   # SMEM scalar, logit scale (-inf => keep all)

    # --- shrink-map BCE (probability input; torch BCELoss clamps logs at -100).
    mask_s = jnp.logical_or(shrink >= thr_s, pos).astype(jnp.float32)
    log_p = jnp.maximum(jnp.log(shrink), -100.0)
    log_1mp = jnp.maximum(jnp.log(1.0 - shrink), -100.0)
    bce_s = -(gt_s * log_p + (1.0 - gt_s) * log_1mp)
    sum_s = jnp.sum(bce_s * mask_s)
    cnt_s = jnp.sum(mask_s)

    # --- binary-map BCE directly from logits (stable softplus form).
    # -log(sigmoid(x)) = softplus(-x); -log(1-sigmoid(x)) = softplus(x);
    # per-term min(.,100) reproduces torch's -100 log clamp.
    mask_b = jnp.logical_or(logits >= thr_b, pos).astype(jnp.float32)
    sp_base = jnp.log(1.0 + jnp.exp(-jnp.abs(logits)))
    sp_pos = jnp.maximum(logits, 0.0) + sp_base
    sp_neg = jnp.maximum(-logits, 0.0) + sp_base
    bce_b = gt_s * jnp.minimum(sp_neg, 100.0) + (1.0 - gt_s) * jnp.minimum(sp_pos, 100.0)
    sum_b = jnp.sum(bce_b * mask_b)
    cnt_b = jnp.sum(mask_b)

    # --- threshold-map masked L1.
    sel = jnp.logical_or(gt_t > 0.0, gt_s > 0.0).astype(jnp.float32)
    sum_t = jnp.sum(jnp.abs(thresh - gt_t) * sel)
    cnt_t = jnp.sum(sel)

    # Accumulate per-sample partials into lanes 0..5 of the resident block.
    lane = jax.lax.broadcasted_iota(jnp.int32, (8, 128), 1)
    contrib = (jnp.where(lane == 0, sum_s, 0.0)
               + jnp.where(lane == 1, cnt_s, 0.0)
               + jnp.where(lane == 2, sum_b, 0.0)
               + jnp.where(lane == 3, cnt_b, 0.0)
               + jnp.where(lane == 4, sum_t, 0.0)
               + jnp.where(lane == 5, cnt_t, 0.0))
    out_ref[0] = out_ref[0] + contrib


# ----------------------------------------------------------------------------
# OHEM threshold selection: exact k-th largest negative score, NO SORT.
# Radix bisection (32 masked-count passes) on the monotone uint32 float key.
# ----------------------------------------------------------------------------
def _float_key(x_f32):
    bits = jax.lax.bitcast_convert_type(x_f32, jnp.uint32)
    neg = bits >= jnp.uint32(0x80000000)
    return jnp.where(neg,
                     jnp.uint32(0xFFFFFFFF) - bits,
                     bits + jnp.uint32(0x80000000))


def _key_to_float(key):
    neg = key < jnp.uint32(0x80000000)
    bits = jnp.where(neg,
                     jnp.uint32(0xFFFFFFFF) - key,
                     key - jnp.uint32(0x80000000))
    return jax.lax.bitcast_convert_type(bits, jnp.float32)


def _ohem_thresholds(score, gt, ohem_ratio):
    """Per-sample OHEM threshold (exact k-th largest score among gt<=0.5 pixels);
    -inf means 'select everything'."""
    b = score.shape[0]
    n = score.shape[-1] * score.shape[-2]
    s = score.reshape(b, n).astype(jnp.float32)
    g = gt.reshape(b, n)
    pos = g > 0.5
    pos_num = jnp.sum(pos.astype(jnp.int32), axis=1)
    neg_total = n - pos_num
    neg_num = jnp.minimum(pos_num * ohem_ratio, neg_total)
    use_all = jnp.logical_or(pos_num == 0, neg_num == 0)

    # Positive pixels get key 0 so every candidate (>=1) excludes them.
    keys = jnp.where(pos, jnp.uint32(0), _float_key(s))
    k = neg_num

    def body(i, v):
        shift = jnp.asarray(31 - i, dtype=jnp.uint32)
        cand = v | (jnp.uint32(1) << shift)
        cnt = jnp.sum((keys >= cand[:, None]).astype(jnp.int32), axis=1)
        return jnp.where(cnt >= k, cand, v)

    v = jax.lax.fori_loop(0, 32, body, jnp.zeros((b,), jnp.uint32))
    thr = _key_to_float(v)
    return jnp.where(use_all, jnp.float32(-jnp.inf), thr)


# ----------------------------------------------------------------------------
# Wrapper
# ----------------------------------------------------------------------------
def _pick_tile_h(h, max_th=128):
    if h <= max_th:
        return h
    for th in range(max_th, 7, -1):
        if h % th == 0 and th % 8 == 0:
            return th
    return h   # fallback: full extent is always a legal block


def db_loss(outputs, gt_shrink, gt_threshold,
            alpha=ALPHA, beta=BETA, ohem_ratio=OHEM_RATIO, reduction="mean"):
    assert reduction in ("mean", "sum")
    B, C, H, W = outputs.shape
    assert C == 3

    # OHEM thresholds in plain JAX (exact, sort-free).
    # shrink-map OHEM scores = probabilities; binary-map OHEM thresholded on raw
    # logits (sigmoid is monotone, so the selected set is identical up to f32 ties).
    thr_shrink = _ohem_thresholds(outputs[:, 0], gt_shrink, ohem_ratio)
    thr_binary = _ohem_thresholds(outputs[:, 2], gt_shrink, ohem_ratio)

    th = _pick_tile_h(H)
    n_h = H // th

    # Size the scoped VMEM limit from the (padded) block footprint, double-buffered.
    thp = ((th + 7) // 8) * 8
    wp = ((W + 127) // 128) * 128
    isz = jnp.dtype(outputs.dtype).itemsize
    gsz = jnp.dtype(gt_shrink.dtype).itemsize + jnp.dtype(gt_threshold.dtype).itemsize
    block_bytes = thp * wp * (3 * isz + gsz)
    vmem_limit = int(min(64 << 20, max(4 * block_bytes + (4 << 20), 16 << 20)))

    acc = pl.pallas_call(
        _dbloss_kernel,
        out_shape=jax.ShapeDtypeStruct((B, 8, 128), jnp.float32),
        grid=(B, n_h),
        in_specs=[
            pl.BlockSpec((1, 3, th, W), lambda b, h: (b, 0, h, 0)),
            pl.BlockSpec((1, th, W), lambda b, h: (b, h, 0)),
            pl.BlockSpec((1, th, W), lambda b, h: (b, h, 0)),
            pl.BlockSpec(memory_space=pltpu.MemorySpace.SMEM),
            pl.BlockSpec(memory_space=pltpu.MemorySpace.SMEM),
        ],
        out_specs=pl.BlockSpec((1, 8, 128), lambda b, h: (b, 0, 0)),
        compiler_params=pltpu.CompilerParams(
            dimension_semantics=("parallel", "arbitrary"),
            vmem_limit_bytes=vmem_limit),
    )(outputs, gt_shrink, gt_threshold, thr_shrink, thr_binary)

    sums = acc[:, 0, :]   # (B, 128): lanes 0..5 = s_sum, s_cnt, b_sum, b_cnt, t_sum, t_cnt

    def per_sample_mean(s, c):
        return jnp.where(c > 0.0, s / jnp.maximum(c, 1.0), 0.0)

    ls = per_sample_mean(sums[:, 0], sums[:, 1])
    lb = per_sample_mean(sums[:, 2], sums[:, 3])
    lt = per_sample_mean(sums[:, 4], sums[:, 5])
    red = jnp.mean if reduction == "mean" else jnp.sum
    loss_shrink = red(ls)
    loss_binary = red(lb)
    loss_threshold = red(lt)
    loss_all = loss_shrink + alpha * loss_binary + beta * loss_threshold
    return loss_all, loss_shrink, loss_binary, loss_threshold


# ----------------------------------------------------------------------------
# Pure-numpy reference (mirrors the PyTorch module semantics)
# ----------------------------------------------------------------------------
def _db_loss_reference(outputs, gt_shrink, gt_threshold,
                       alpha=ALPHA, beta=BETA, ohem_ratio=OHEM_RATIO):
    outputs = np.asarray(outputs, dtype=np.float32)
    gt_shrink = np.asarray(gt_shrink, dtype=np.float32)
    gt_threshold = np.asarray(gt_threshold, dtype=np.float32)

    def ohem_single(score, gt_text):
        pos_num = int(np.sum(gt_text > 0.5))
        if pos_num == 0:
            return np.ones_like(score, dtype=np.float32)
        neg_num = int(np.sum(gt_text <= 0.5))
        neg_num = int(min(pos_num * ohem_ratio, neg_num))
        if neg_num == 0:
            return np.ones_like(score, dtype=np.float32)
        neg_score = score[gt_text <= 0.5]
        neg_score_sorted = np.sort(-neg_score)
        threshold = -neg_score_sorted[neg_num - 1]
        return ((score >= threshold) | (gt_text > 0.5)).astype(np.float32)

    def bce(pred, target, mask):
        if mask.sum() == 0:
            return 0.0
        p = pred[mask.astype(bool)]
        t = target[mask.astype(bool)]
        lp = np.maximum(np.log(p), -100.0)
        l1p = np.maximum(np.log(1.0 - p), -100.0)
        return float(np.mean(-(t * lp + (1.0 - t) * l1p)))

    ls_l, lb_l, lt_l = [], [], []
    for b in range(outputs.shape[0]):
        shrink = outputs[b, 0]
        thr_m = outputs[b, 1]
        bin_m = outputs[b, 2]
        gs = gt_shrink[b]
        gt = gt_threshold[b]
        sig = (1.0 / (1.0 + np.exp(-bin_m.astype(np.float64)))).astype(np.float32)
        ls_l.append(bce(shrink, gs, ohem_single(shrink, gs)))
        lb_l.append(bce(sig, gs, ohem_single(sig, gs)))
        sel = (gt > 0) | (gs > 0)
        lt_l.append(0.0 if sel.sum() == 0 else float(np.mean(np.abs(thr_m - gt)[sel])))
    ls = float(np.mean(ls_l))
    lb = float(np.mean(lb_l))
    lt = float(np.mean(lt_l))
    return ls + alpha * lb + beta * lt, ls, lb, lt


if __name__ == "__main__":
    key = jax.random.PRNGKey(0)
    B, H, W = 2, 16, 16
    k1, k2, k3, k4, k5, k6 = jax.random.split(key, 6)

    shrink = jax.nn.sigmoid(jax.random.normal(k1, (B, 1, H, W)))
    thr_map = jax.nn.sigmoid(jax.random.normal(k2, (B, 1, H, W)))
    binary = jax.random.normal(k3, (B, 1, H, W))
    outputs = jnp.concatenate([shrink, thr_map, binary], axis=1).astype(jnp.float32)

    gt_shrink = (jax.random.uniform(k4, (B, H, W)) > 0.9).astype(jnp.float32)
    gt_threshold = (jax.random.uniform(k5, (B, H, W))
                    * (jax.random.uniform(k6, (B, H, W)) > 0.6)).astype(jnp.float32)

    result = db_loss(outputs, gt_shrink, gt_threshold)
    result = jax.block_until_ready(result)

    ref = _db_loss_reference(outputs, gt_shrink, gt_threshold)
    np.testing.assert_allclose(np.array([float(x) for x in result]),
                               np.array(ref, dtype=np.float32),
                               rtol=1e-3, atol=1e-3)
    print("KERNEL_OK")
</pallas_src>

<mosaic_0001>
module attributes {stable_mosaic.version = 11 : i64} {
  func.func @_dbloss_kernel(%arg0: i32, %arg1: i32, %arg2: memref<1x3x16x16xf32, #tpu.memory_space<vmem>>, %arg3: memref<1x16x16xf32, #tpu.memory_space<vmem>>, %arg4: memref<1x16x16xf32, #tpu.memory_space<vmem>>, %arg5: memref<2xf32, #tpu.memory_space<smem>>, %arg6: memref<2xf32, #tpu.memory_space<smem>>, %arg7: memref<1x8x128xf32, #tpu.memory_space<vmem>>) attributes {dimension_semantics = [#tpu.dimension_semantics<parallel>, #tpu.dimension_semantics<arbitrary>], iteration_bounds = array<i64: 2, 1>, scalar_prefetch = 0 : i64, scratch_operands = 0 : i64, tpu.core_type = #tpu.core_type<tc>, window_params = [{transform_indices = @transform_0, window_bounds = array<i64: 1, 3, 16, 16>}, {transform_indices = @transform_1, window_bounds = array<i64: 1, 16, 16>}, {transform_indices = @transform_2, window_bounds = array<i64: 1, 16, 16>}, {transform_indices = @transform_3, window_bounds = array<i64: 2>}, {transform_indices = @transform_4, window_bounds = array<i64: 2>}, {transform_indices = @transform_5, window_bounds = array<i64: 1, 8, 128>}]} {
    %c0_i32 = arith.constant 0 : i32
    %0 = arith.cmpi eq, %arg1, %c0_i32 : i32
    %1 = arith.extui %0 : i1 to i32
    %c0_i32_0 = arith.constant 0 : i32
    %2 = arith.cmpi ne, %1, %c0_i32_0 : i32
    scf.if %2 {
      %cst_50 = arith.constant 0.000000e+00 : f32
      %146 = vector.broadcast %cst_50 : f32 to vector<1x8x128xf32>
      %c0_51 = arith.constant 0 : index
      %c0_52 = arith.constant 0 : index
      %c0_53 = arith.constant 0 : index
      %147 = vector.load %arg7[%c0_51, %c0_52, %c0_53] : memref<1x8x128xf32, #tpu.memory_space<vmem>>, vector<1x8x128xf32>
      tpu.vector_store %arg7[%c0_51, %c0_52, %c0_53], %146 {strides = array<i32>} : memref<1x8x128xf32, #tpu.memory_space<vmem>>, vector<1x8x128xf32>,
    } else {
    }
    %c0 = arith.constant 0 : index
    %c0_1 = arith.constant 0 : index
    %c0_2 = arith.constant 0 : index
    %c0_3 = arith.constant 0 : index
    %3 = vector.load %arg2[%c0, %c0_1, %c0_2, %c0_3] : memref<1x3x16x16xf32, #tpu.memory_space<vmem>>, vector<1x1x16x16xf32>
    %4 = vector.shape_cast %3 : vector<1x1x16x16xf32> to vector<16x16xf32>
    %c0_4 = arith.constant 0 : index
    %c1 = arith.constant 1 : index
    %c0_5 = arith.constant 0 : index
    %c0_6 = arith.constant 0 : index
    %5 = vector.load %arg2[%c0_4, %c1, %c0_5, %c0_6] : memref<1x3x16x16xf32, #tpu.memory_space<vmem>>, vector<1x1x16x16xf32>
    %6 = vector.shape_cast %5 : vector<1x1x16x16xf32> to vector<16x16xf32>
    %c0_7 = arith.constant 0 : index
    %c2 = arith.constant 2 : index
    %c0_8 = arith.constant 0 : index
    %c0_9 = arith.constant 0 : index
    %7 = vector.load %arg2[%c0_7, %c2, %c0_8, %c0_9] : memref<1x3x16x16xf32, #tpu.memory_space<vmem>>, vector<1x1x16x16xf32>
    %8 = vector.shape_cast %7 : vector<1x1x16x16xf32> to vector<16x16xf32>
    %c0_10 = arith.constant 0 : index
    %c0_11 = arith.constant 0 : index
    %c0_12 = arith.constant 0 : index
    %9 = vector.load %arg3[%c0_10, %c0_11, %c0_12] : memref<1x16x16xf32, #tpu.memory_space<vmem>>, vector<1x16x16xf32>
    %10 = vector.shape_cast %9 : vector<1x16x16xf32> to vector<16x16xf32>
    %c0_13 = arith.constant 0 : index
    %c0_14 = arith.constant 0 : index
    %c0_15 = arith.constant 0 : index
    %11 = vector.load %arg4[%c0_13, %c0_14, %c0_15] : memref<1x16x16xf32, #tpu.memory_space<vmem>>, vector<1x16x16xf32>
    %12 = vector.shape_cast %11 : vector<1x16x16xf32> to vector<16x16xf32>
    %cst = arith.constant 5.000000e-01 : f32
    %13 = vector.broadcast %cst : f32 to vector<16x16xf32>
    %14 = arith.cmpf ogt, %10, %13 : vector<16x16xf32>
    %15 = arith.index_cast %arg0 : i32 to index
    %16 = memref.load %arg5[%15] : memref<2xf32, #tpu.memory_space<smem>>
    %17 = arith.index_cast %arg0 : i32 to index
    %18 = memref.load %arg6[%17] : memref<2xf32, #tpu.memory_space<smem>>
    %19 = vector.broadcast %16 : f32 to vector<16x16xf32>
    %20 = arith.cmpf oge, %4, %19 : vector<16x16xf32>
    %21 = arith.ori %20, %14 : vector<16x16xi1>
    %22 = arith.extui %21 : vector<16x16xi1> to vector<16x16xi32>
    %23 = arith.sitofp %22 : vector<16x16xi32> to vector<16x16xf32>
    %24 = math.log %4 : vector<16x16xf32>
    %cst_16 = arith.constant -1.000000e+02 : f32
    %25 = vector.broadcast %cst_16 : f32 to vector<16x16xf32>
    %26 = arith.maximumf %24, %25 : vector<16x16xf32>
    %cst_17 = arith.constant 1.000000e+00 : f32
    %27 = vector.broadcast %cst_17 : f32 to vector<16x16xf32>
    %28 = arith.subf %27, %4 : vector<16x16xf32>
    %29 = math.log %28 : vector<16x16xf32>
    %cst_18 = arith.constant -1.000000e+02 : f32
    %30 = vector.broadcast %cst_18 : f32 to vector<16x16xf32>
    %31 = arith.maximumf %29, %30 : vector<16x16xf32>
    %32 = arith.mulf %10, %26 : vector<16x16xf32>
    %cst_19 = arith.constant 1.000000e+00 : f32
    %33 = vector.broadcast %cst_19 : f32 to vector<16x16xf32>
    %34 = arith.subf %33, %10 : vector<16x16xf32>
    %35 = arith.mulf %34, %31 : vector<16x16xf32>
    %36 = arith.addf %32, %35 : vector<16x16xf32>
    %cst_20 = arith.constant 0.000000e+00 : f32
    %37 = vector.broadcast %cst_20 : f32 to vector<16x16xf32>
    %38 = arith.subf %37, %36 : vector<16x16xf32>
    %39 = arith.mulf %38, %23 : vector<16x16xf32>
    %40 = vector.shape_cast %39 : vector<16x16xf32> to vector<1x16x16xf32>
    %cst_21 = arith.constant dense<0.000000e+00> : vector<1xf32>
    %41 = vector.multi_reduction <add>, %40, %cst_21 [1, 2] : vector<1x16x16xf32> to vector<1xf32>
    %42 = vector.shape_cast %41 : vector<1xf32> to vector<1x1x1xf32>
    %43 = vector.extract %42[0, 0, 0] : f32 from vector<1x1x1xf32>
    %44 = vector.shape_cast %23 : vector<16x16xf32> to vector<1x16x16xf32>
    %cst_22 = arith.constant dense<0.000000e+00> : vector<1xf32>
    %45 = vector.multi_reduction <add>, %44, %cst_22 [1, 2] : vector<1x16x16xf32> to vector<1xf32>
    %46 = vector.shape_cast %45 : vector<1xf32> to vector<1x1x1xf32>
    %47 = vector.extract %46[0, 0, 0] : f32 from vector<1x1x1xf32>
    %48 = vector.broadcast %18 : f32 to vector<16x16xf32>
    %49 = arith.cmpf oge, %8, %48 : vector<16x16xf32>
    %50 = arith.ori %49, %14 : vector<16x16xi1>
    %51 = arith.extui %50 : vector<16x16xi1> to vector<16x16xi32>
    %52 = arith.sitofp %51 : vector<16x16xi32> to vector<16x16xf32>
    %53 = math.absf %8 : vector<16x16xf32>
    %cst_23 = arith.constant 0.000000e+00 : f32
    %54 = vector.broadcast %cst_23 : f32 to vector<16x16xf32>
    %55 = arith.subf %54, %53 : vector<16x16xf32>
    %56 = math.exp %55 : vector<16x16xf32>
    %cst_24 = arith.constant 1.000000e+00 : f32
    %57 = vector.broadcast %cst_24 : f32 to vector<16x16xf32>
    %58 = arith.addf %57, %56 : vector<16x16xf32>
    %59 = math.log %58 : vector<16x16xf32>
    %cst_25 = arith.constant 0.000000e+00 : f32
    %60 = vector.broadcast %cst_25 : f32 to vector<16x16xf32>
    %61 = arith.maximumf %8, %60 : vector<16x16xf32>
    %62 = arith.addf %61, %59 : vector<16x16xf32>
    %cst_26 = arith.constant 0.000000e+00 : f32
    %63 = vector.broadcast %cst_26 : f32 to vector<16x16xf32>
    %64 = arith.subf %63, %8 : vector<16x16xf32>
    %cst_27 = arith.constant 0.000000e+00 : f32
    %65 = vector.broadcast %cst_27 : f32 to vector<16x16xf32>
    %66 = arith.maximumf %64, %65 : vector<16x16xf32>
    %67 = arith.addf %66, %59 : vector<16x16xf32>
    %cst_28 = arith.constant 1.000000e+02 : f32
    %68 = vector.broadcast %cst_28 : f32 to vector<16x16xf32>
    %69 = arith.minimumf %67, %68 : vector<16x16xf32>
    %70 = arith.mulf %10, %69 : vector<16x16xf32>
    %cst_29 = arith.constant 1.000000e+00 : f32
    %71 = vector.broadcast %cst_29 : f32 to vector<16x16xf32>
    %72 = arith.subf %71, %10 : vector<16x16xf32>
    %cst_30 = arith.constant 1.000000e+02 : f32
    %73 = vector.broadcast %cst_30 : f32 to vector<16x16xf32>
    %74 = arith.minimumf %62, %73 : vector<16x16xf32>
    %75 = arith.mulf %72, %74 : vector<16x16xf32>
    %76 = arith.addf %70, %75 : vector<16x16xf32>
    %77 = arith.mulf %76, %52 : vector<16x16xf32>
    %78 = vector.shape_cast %77 : vector<16x16xf32> to vector<1x16x16xf32>
    %cst_31 = arith.constant dense<0.000000e+00> : vector<1xf32>
    %79 = vector.multi_reduction <add>, %78, %cst_31 [1, 2] : vector<1x16x16xf32> to vector<1xf32>
    %80 = vector.shape_cast %79 : vector<1xf32> to vector<1x1x1xf32>
    %81 = vector.extract %80[0, 0, 0] : f32 from vector<1x1x1xf32>
    %82 = vector.shape_cast %52 : vector<16x16xf32> to vector<1x16x16xf32>
    %cst_32 = arith.constant dense<0.000000e+00> : vector<1xf32>
    %83 = vector.multi_reduction <add>, %82, %cst_32 [1, 2] : vector<1x16x16xf32> to vector<1xf32>
    %84 = vector.shape_cast %83 : vector<1xf32> to vector<1x1x1xf32>
    %85 = vector.extract %84[0, 0, 0] : f32 from vector<1x1x1xf32>
    %cst_33 = arith.constant 0.000000e+00 : f32
    %86 = vector.broadcast %cst_33 : f32 to vector<16x16xf32>
    %87 = arith.cmpf ogt, %12, %86 : vector<16x16xf32>
    %cst_34 = arith.constant 0.000000e+00 : f32
    %88 = vector.broadcast %cst_34 : f32 to vector<16x16xf32>
    %89 = arith.cmpf ogt, %10, %88 : vector<16x16xf32>
    %90 = arith.ori %87, %89 : vector<16x16xi1>
    %91 = arith.extui %90 : vector<16x16xi1> to vector<16x16xi32>
    %92 = arith.sitofp %91 : vector<16x16xi32> to vector<16x16xf32>
    %93 = arith.subf %6, %12 : vector<16x16xf32>
    %94 = math.absf %93 : vector<16x16xf32>
    %95 = arith.mulf %94, %92 : vector<16x16xf32>
    %96 = vector.shape_cast %95 : vector<16x16xf32> to vector<1x16x16xf32>
    %cst_35 = arith.constant dense<0.000000e+00> : vector<1xf32>
    %97 = vector.multi_reduction <add>, %96, %cst_35 [1, 2] : vector<1x16x16xf32> to vector<1xf32>
    %98 = vector.shape_cast %97 : vector<1xf32> to vector<1x1x1xf32>
    %99 = vector.extract %98[0, 0, 0] : f32 from vector<1x1x1xf32>
    %100 = vector.shape_cast %92 : vector<16x16xf32> to vector<1x16x16xf32>
    %cst_36 = arith.constant dense<0.000000e+00> : vector<1xf32>
    %101 = vector.multi_reduction <add>, %100, %cst_36 [1, 2] : vector<1x16x16xf32> to vector<1xf32>
    %102 = vector.shape_cast %101 : vector<1xf32> to vector<1x1x1xf32>
    %103 = vector.extract %102[0, 0, 0] : f32 from vector<1x1x1xf32>
    %104 = tpu.iota {dimensions = array<i32: 1>} : vector<8x128xi32>
    %c0_i32_37 = arith.constant 0 : i32
    %105 = vector.broadcast %c0_i32_37 : i32 to vector<8x128xi32>
    %106 = arith.cmpi eq, %104, %105 : vector<8x128xi32>
    %cst_38 = arith.constant 0.000000e+00 : f32
    %107 = vector.broadcast %43 : f32 to vector<8x128xf32>
    %108 = vector.broadcast %cst_38 : f32 to vector<8x128xf32>
    %109 = arith.select %106, %107, %108 : vector<8x128xi1>, vector<8x128xf32>
    %c1_i32 = arith.constant 1 : i32
    %110 = vector.broadcast %c1_i32 : i32 to vector<8x128xi32>
    %111 = arith.cmpi eq, %104, %110 : vector<8x128xi32>
    %cst_39 = arith.constant 0.000000e+00 : f32
    %112 = vector.broadcast %47 : f32 to vector<8x128xf32>
    %113 = vector.broadcast %cst_39 : f32 to vector<8x128xf32>
    %114 = arith.select %111, %112, %113 : vector<8x128xi1>, vector<8x128xf32>
    %115 = arith.addf %109, %114 : vector<8x128xf32>
    %c2_i32 = arith.constant 2 : i32
    %116 = vector.broadcast %c2_i32 : i32 to vector<8x128xi32>
    %117 = arith.cmpi eq, %104, %116 : vector<8x128xi32>
    %cst_40 = arith.constant 0.000000e+00 : f32
    %118 = vector.broadcast %81 : f32 to vector<8x128xf32>
    %119 = vector.broadcast %cst_40 : f32 to vector<8x128xf32>
    %120 = arith.select %117, %118, %119 : vector<8x128xi1>, vector<8x128xf32>
    %121 = arith.addf %115, %120 : vector<8x128xf32>
    %c3_i32 = arith.constant 3 : i32
    %122 = vector.broadcast %c3_i32 : i32 to vector<8x128xi32>
    %123 = arith.cmpi eq, %104, %122 : vector<8x128xi32>
    %cst_41 = arith.constant 0.000000e+00 : f32
    %124 = vector.broadcast %85 : f32 to vector<8x128xf32>
    %125 = vector.broadcast %cst_41 : f32 to vector<8x128xf32>
    %126 = arith.select %123, %124, %125 : vector<8x128xi1>, vector<8x128xf32>
    %127 = arith.addf %121, %126 : vector<8x128xf32>
    %c4_i32 = arith.constant 4 : i32
    %128 = vector.broadcast %c4_i32 : i32 to vector<8x128xi32>
    %129 = arith.cmpi eq, %104, %128 : vector<8x128xi32>
    %cst_42 = arith.constant 0.000000e+00 : f32
    %130 = vector.broadcast %99 : f32 to vector<8x128xf32>
    %131 = vector.broadcast %cst_42 : f32 to vector<8x128xf32>
    %132 = arith.select %129, %130, %131 : vector<8x128xi1>, vector<8x128xf32>
    %133 = arith.addf %127, %132 : vector<8x128xf32>
    %c5_i32 = arith.constant 5 : i32
    %134 = vector.broadcast %c5_i32 : i32 to vector<8x128xi32>
    %135 = arith.cmpi eq, %104, %134 : vector<8x128xi32>
    %cst_43 = arith.constant 0.000000e+00 : f32
    %136 = vector.broadcast %103 : f32 to vector<8x128xf32>
    %137 = vector.broadcast %cst_43 : f32 to vector<8x128xf32>
    %138 = arith.select %135, %136, %137 : vector<8x128xi1>, vector<8x128xf32>
    %139 = arith.addf %133, %138 : vector<8x128xf32>
    %c0_44 = arith.constant 0 : index
    %c0_45 = arith.constant 0 : index
    %c0_46 = arith.constant 0 : index
    %140 = vector.load %arg7[%c0_44, %c0_45, %c0_46] : memref<1x8x128xf32, #tpu.memory_space<vmem>>, vector<1x8x128xf32>
    %141 = vector.shape_cast %140 : vector<1x8x128xf32> to vector<8x128xf32>
    %142 = arith.addf %141, %139 : vector<8x128xf32>
    %c0_47 = arith.constant 0 : index
    %c0_48 = arith.constant 0 : index
    %c0_49 = arith.constant 0 : index
    %143 = vector.load %arg7[%c0_47, %c0_48, %c0_49] : memref<1x8x128xf32, #tpu.memory_space<vmem>>, vector<1x8x128xf32>
    %144 = vector.shape_cast %143 : vector<1x8x128xf32> to vector<8x128xf32>
    %145 = vector.shape_cast %142 : vector<8x128xf32> to vector<1x8x128xf32>
    tpu.vector_store %arg7[%c0_47, %c0_48, %c0_49], %145 {strides = array<i32>} : memref<1x8x128xf32, #tpu.memory_space<vmem>>, vector<1x8x128xf32>,
    return
  }
  func.func @transform_0(%arg0: i32, %arg1: i32) -> (i32, i32, i32, i32) {
    %c0_i32 = arith.constant 0 : i32
    %c0_i32_0 = arith.constant 0 : i32
    %c0_i32_1 = arith.constant 0 : i32
    return %arg0, %c0_i32, %arg1, %c0_i32_0 : i32, i32, i32, i32
  }
  func.func @transform_1(%arg0: i32, %arg1: i32) -> (i32, i32, i32) {
    %c0_i32 = arith.constant 0 : i32
    %c0_i32_0 = arith.constant 0 : i32
    return %arg0, %arg1, %c0_i32 : i32, i32, i32
  }
  func.func @transform_2(%arg0: i32, %arg1: i32) -> (i32, i32, i32) {
    %c0_i32 = arith.constant 0 : i32
    %c0_i32_0 = arith.constant 0 : i32
    return %arg0, %arg1, %c0_i32 : i32, i32, i32
  }
  func.func @transform_3(%arg0: i32, %arg1: i32) -> i32 {
    %c0_i32 = arith.constant 0 : i32
    %c0_i32_0 = arith.constant 0 : i32
    return %c0_i32 : i32
  }
  func.func @transform_4(%arg0: i32, %arg1: i32) -> i32 {
    %c0_i32 = arith.constant 0 : i32
    %c0_i32_0 = arith.constant 0 : i32
    return %c0_i32 : i32
  }
  func.func @transform_5(%arg0: i32, %arg1: i32) -> (i32, i32, i32) {
    %c0_i32 = arith.constant 0 : i32
    %c0_i32_0 = arith.constant 0 : i32
    %c0_i32_1 = arith.constant 0 : i32
    return %arg0, %c0_i32, %c0_i32_0 : i32, i32, i32
  }
}

</mosaic_0001>

<bundles_post_ra>
// kernel: tpu_custom_call.1
= control target key start
LH: loop header
LB: loop body
LE: loop exit
PB: predicated region body
PF: predicated region fallthrough
CT: control target
= control target key end

     0   :  { %s1471_s0 = inlined_call_operand.hbm [shape: f32[2,3,16,16], index: 0, kind: input, shape index: {}]   ;;  %s1472_s1 = inlined_call_operand.hbm [shape: f32[2,16,16], index: 1, kind: input, shape index: {}]   ;;  %s1473_s2 = inlined_call_operand.hbm [shape: f32[2,16,16], index: 2, kind: input, shape index: {}]   ;;  %s1474_s3 = inlined_call_operand.vmem [shape: f32[2], index: 3, kind: input, shape index: {}]   ;;  %s1475_s4 = inlined_call_operand.vmem [shape: f32[2], index: 4, kind: input, shape index: {}]   ;;  %s1476_s5 = inlined_call_operand.hbm [shape: f32[2,8,128], index: 5, kind: output, shape index: {}]  }
   0x1   :  { %1490 = sst [smem:[#allocation21_spill]] %s1472_s1 }
   0x2   :  { %1491 = sst [smem:[#allocation22_spill]] %s1473_s2 }
   0x3   :  { %1492 = sst [smem:[#allocation23_spill]] %s1474_s3 }
   0x4   :  { %1493 = sst [smem:[#allocation24_spill]] %s1475_s4 }
   0x5   :  { %10 = vsyncpa [#allocation3], 0 }
   0x6   :  { %12 = vsyncpa [#allocation3 + $0x1], 0 }
   0x7   :  { %13 = vsyncpa [#allocation7], 0 }
   0x8   :  { %15 = vsyncpa [#allocation7 + $0x1], 0 }
   0x9   :  { %16 = vsyncpa [#allocation5], 0 }
   0xa   :  { %17 = vsyncpa [#allocation11], 0 }
   0xb   :  { %18 = vsyncpa [#allocation4], 0 }
   0xc   :  { %20 = vsyncpa [#allocation4 + $0x1], 0  ;;  %s1167_s18 = smov 0   ;;  %s1169_s19 = smov 0  }
   0xd   :  { %s1171_s20 = smov 0   ;;  %s1173_s21 = smov 0  }
   0xe   :  { %s1175_s22 = smov 0   ;;  %s1177_s23 = smov 0  }
   0xf LB: > { %1494 = sst [smem:[#allocation18_spill]] %s1122_s22  ;;  %s38_s24 = sadd.s32 1, %s1122_s22  ;;  %s1126_s23 = sphi %s1177_s23, %s26_s23   ;;  %s1122_s22 = sphi %s1175_s22, %s1525_s22   ;;  %s1118_s21 = sphi %s1173_s21, %s1524_s21   ;;  %s1114_s20 = sphi %s1171_s20, %s1528_s20   ;;  %s1110_s19 = sphi %s1169_s19, %s1527_s19   ;;  %s1106_s18 = sphi %s1167_s18, %s1526_s18  }
  0x10   : > { %s47_s25 = sadd.s32 1, %s1114_s20  ;;  %p40_p0 = scmp.ge.s32.totalorder %s38_s24, 2 }
  0x11   : > { %p54_p1 = scmp.ne.s32.totalorder %s1114_s20, %s1110_s19  ;;  %p55_p2 = scmp.eq.s32.totalorder %s1126_s23, 0 }
  0x12   : > { %s1530_s24 = smov (%p40_p0, %s38_s24), 0  ;;  %p847_p5 = scmp.lt.s32.totalorder %s1126_s23, 2 }
  0x13   : > { %1495 = sst [smem:[#allocation19_spill]] %s1530_s24  ;;  %p56_p4 = por %p55_p2, %p54_p1 }
  0x14   : > { %s42_s26 = ssub.s32 %s1122_s22, %s1530_s24  ;;  %s1212_s27 = sand.u32 1, %s1114_s20  }
  0x15   : > { %p45_p6 = scmp.eq.s32.totalorder %s42_s26, 0  ;;  %p1214_p7 = pnand %p847_p5, %p56_p4 }
  0x16   : > { %s253_s30 = sand.u32 1, %s1126_s23   ;;  %s765_s6 = sshll.u32 %s1212_s27, 4 }
  0x17   : > { %s1496_s28 = scalar_select %p1214_p7, 1, 0 }
  0x18   : > { %s1219_s29 = scalar_select %p45_p6, %s1114_s20, %s47_s25  }
  0x19   : > { %s791_s7 = sshll.u32 %s1122_s22, 8  ;;  %s1498_s1 = sld [smem:[#allocation21_spill]] }
  0x1a   : > { %1497 = sst [smem:[#allocation20_spill]] %s1219_s29  ;;  %s257_s11 = scalar_lea.vmem [#allocation6], %s765_s6 }
  0x1b   : > { %s266_s12 = sshll.u32 %s257_s11, 4  ;;  %s1227_s13 = scalar_lea.sflag [#allocation7], %s253_s30  ;;  %s267_s12 = int_to_ptr.vmem [resolvable:$true] %s266_s12 }
  0x1c   : > { %p1481_p8 = pneg %p1214_p7  ;;  %s933_s14 = scalar_lea.vmem %s267_s12, 256 }
  0x1d   : > { %p934_p9 = scmp.ne.s32.totalorder %s267_s12, %s933_s14  ;;  %s1128_s15 = smov [#allocation6]  }
  0x1e   : > { %s938_s16 = sshll.u32 %s1128_s15, 4  ;;  %s939_s16 = int_to_ptr.vmem [resolvable:$false] %s938_s16 }
  0x1f   : > { %s265_s10 = scalar_lea.hbm %s1498_s1, %s791_s7  ;;  %p936_p10 = pnand %p934_p9, %p1481_p8 }
  0x20   : > { %s940_s17 = scalar_lea.vmem %s939_s16, 512  ;;  %p941_p12 = scmp.lt.s32.totalorder %s267_s12, %s939_s16 }
  0x21   : > { %p937_p11 = pneg %p936_p10  ;;  %p942_p13 = scmp.lt.s32.totalorder %s940_s17, %s933_s14 }
  0x23   : > { %p943_p0 = por %p942_p13, %p941_p12 }
  0x25   : > { %p944_p2 = pnand %p943_p0, %p937_p11 }
  0x27   : > { %947 = shalt.err (!%p944_p2)
}
  0x28   : > { %s1477_s25 = smov 128   ;;  %s1479_s26 = smov 8  }
  0x29   : > { %837 = dma.hbm_to_vmem [thread:$0]  (!%p1214_p7), %s265_s10, 256, %s267_s12, %s1227_s13, %s1477_s25, %s1477_s25, %s1479_s26  }
  0x2a   : > { %s1499_s2 = sld [smem:[#allocation22_spill]]  ;;  %s280_s11 = scalar_lea.vmem [#allocation8], %s765_s6 }
  0x2b   : > { %s289_s14 = sshll.u32 %s280_s11, 4  ;;  %s1246_s15 = sadd.s32 4294967295, %s1126_s23   ;;  %s1275_s14 = int_to_ptr.vmem [resolvable:$true] %s289_s14 }
  0x2c   : > { %s759_s16 = sadd.s32 4294967294, %s1126_s23   ;;  %p60_p4 = scmp.ne.s32.totalorder %s1110_s19, %s1106_s18 }
  0x2d   : > { %p1483_p5 = scmp.eq.s32.totalorder %s1246_s15, 0  ;;  %p182_p6 = scmp.eq.s32.totalorder %s1246_s15, 1 }
  0x2e   : > { %p188_p9 = scmp.eq.s32.totalorder %s759_s16, 1  ;;  %p760_p10 = scmp.ge.s32.totalorder %s1126_s23, 1 }
  0x2f   : > { %p1256_p11 = por %p1483_p5, %p60_p4  ;;  %p1263_p12 = por %p182_p6, %p54_p1 }
  0x30   : > { %s1243_s9 = scalar_lea.hbm %s1499_s2, %s791_s7  ;;  %p1267_p13 = por %p188_p9, %p60_p4 }
  0x31   : > { %s1500_s7 = scalar_select %p1256_p11, 1, 0 }
  0x32   : > { %s1501_s6 = scalar_select %p1263_p12, 1, 0 }
  0x33   : > { %s1502_s10 = scalar_select %p1267_p13, 1, 0 }
  0x34   : > { %p195_p0 = scmp.lt.s32.totalorder %s1126_s23, 3  ;;  %s1503_s3 = sld [smem:[#allocation23_spill]] }
  0x35   : > { %s1505_s4 = sld [smem:[#allocation24_spill]]  ;;  %s793_s12 = smul.u32 48, %s1212_s27 }
  0x36   : > { %p1277_p2 = pnand %p760_p10, %p195_p0  ;;  %s794_s17 = smul.u32 768, %s1122_s22 }
  0x38   : > { %s1504_s8 = scalar_select %p1277_p2, 1, 0 }
  0x39   : > { %p824_p1 = pneg %p1277_p2 }
  0x3a   : > { %s208_s30 = sshll.u32 %s1503_s3, 4  ;;  %s209_s30 = int_to_ptr.vmem [resolvable:$true] %s208_s30 }
  0x3b   : > { %s219_s25 = sshll.u32 %s1505_s4, 4  ;;  %p1288_p4 = pnand %p824_p1, %p1483_p5  ;;  %s220_s25 = int_to_ptr.vmem [resolvable:$true] %s219_s25 }
  0x3c   : > { %s948_s1 = scalar_lea.vmem %s209_s30, 16  ;;  %p956_p3 = scmp.lt.s32.totalorder %s209_s30, %s209_s30 }
  0x3d   : > { %p949_p6 = scmp.ne.s32.totalorder %s209_s30, %s948_s1  ;;  %p950_p9 = pneg %p1288_p4 }
  0x3e   : > { %p957_p8 = scmp.lt.s32.totalorder %s948_s1, %s948_s1 }
  0x3f   : > { %p951_p10 = pnand %p950_p9, %p949_p6 }
  0x40   : > { %p958_p13 = por %p957_p8, %p956_p3 }
  0x41   : > { %p952_p0 = pneg %p951_p10 }
  0x43   : > { %p959_p12 = pnand %p958_p13, %p952_p0 }
  0x45   : > { %962 = shalt.err (!%p959_p12)
}
  0x46   : > { %s1131_s11 = smov [#allocation9]   ;;  %s963_s16 = scalar_lea.vmem %s220_s25, 16 }
  0x47   : > { %827 = dma.vmem_to_smem (!%p1288_p4), %s209_s30, 16, %s1131_s11, [#allocation5]  }
  0x48   : > { %p964_p1 = scmp.ne.s32.totalorder %s220_s25, %s963_s16  ;;  %p971_p2 = scmp.lt.s32.totalorder %s220_s25, %s220_s25 }
  0x49   : > { %p972_p7 = scmp.lt.s32.totalorder %s963_s16, %s963_s16 }
  0x4a   : > { %p966_p5 = pnand %p964_p1, %p950_p9 }
  0x4b   : > { %p973_p6 = por %p972_p7, %p971_p2 }
  0x4c   : > { %p967_p11 = pneg %p966_p5 }
  0x4e   : > { %p974_p10 = pnand %p973_p6, %p967_p11 }
  0x50   : > { %977 = shalt.err (!%p974_p10)
}
  0x51   : > { %s1132_s2 = smov [#allocation10]   ;;  %s242_s4 = scalar_lea.hbm %s1471_s0, %s794_s17 }
  0x52   : > { %830 = dma.vmem_to_smem (!%p1288_p4), %s220_s25, 16, %s1132_s2, [#allocation11]  }
  0x53   : > { %s234_s30 = scalar_lea.vmem [#allocation2], %s793_s12  ;;  %s231_s24 = scalar_lea.sflag [#allocation3], %s1212_s27 }
  0x54   : > { %s243_s11 = sshll.u32 %s234_s30, 4  ;;  %p1507_p8 = scmp.ne.s32.totalorder %s1496_s28, 0  ;;  %s244_s11 = int_to_ptr.vmem [resolvable:$true] %s243_s11 }
  0x55   : > { %s991_s22 = scalar_lea.vmem %s244_s11, 768  ;;  %s1133_s16 = smov [#allocation2]  }
  0x56   : > { %p992_p3 = scmp.ne.s32.totalorder %s244_s11, %s991_s22  ;;  %p1508_p7 = pneg %p1507_p8 }
  0x57   : > { %s996_s29 = sshll.u32 %s1133_s16, 4  ;;  %s997_s29 = int_to_ptr.vmem [resolvable:$false] %s996_s29 }
  0x58   : > { %p994_p5 = pnand %p992_p3, %p1508_p7  ;;  %s998_s26 = scalar_lea.vmem %s997_s29, 1536 }
  0x59   : > { %p999_p12 = scmp.lt.s32.totalorder %s244_s11, %s997_s29  ;;  %p1000_p13 = scmp.lt.s32.totalorder %s998_s26, %s991_s22 }
  0x5a   : > { %p995_p11 = pneg %p994_p5 }
  0x5b   : > { %p1001_p2 = por %p1000_p13, %p999_p12 }
  0x5d   : > { %p1002_p4 = pnand %p1001_p2, %p995_p11 }
  0x5f   : > { %1005 = shalt.err (!%p1002_p4)
}
  0x60   : > { %s1509_s2 = smov 8   ;;  %s1510_s3 = smov 128  }
  0x61   : > { %834 = dma.hbm_to_vmem [thread:$0]  (!%p1507_p8), %s242_s4, 768, %s244_s11, %s231_s24, %s1510_s3, %s1510_s3, %s1509_s2  }
  0x62   : > { %s1019_s27 = scalar_lea.vmem %s1275_s14, 256  ;;  %p1511_p0 = pmov %p1508_p7 }
  0x63   : > { %p1020_p9 = scmp.ne.s32.totalorder %s1275_s14, %s1019_s27  ;;  %s1134_s22 = smov [#allocation8]  }
  0x64   : > { %s1024_s29 = sshll.u32 %s1134_s22, 4  ;;  %s1025_s29 = int_to_ptr.vmem [resolvable:$false] %s1024_s29 }
  0x65   : > { %p1022_p1 = pnand %p1020_p9, %p1511_p0  ;;  %s1026_s25 = scalar_lea.vmem %s1025_s29, 512 }
  0x66   : > { %p1027_p10 = scmp.lt.s32.totalorder %s1275_s14, %s1025_s29  ;;  %p1028_p3 = scmp.lt.s32.totalorder %s1026_s25, %s1019_s27 }
  0x67   : > { %p1023_p6 = pneg %p1022_p1 }
  0x68   : > { %p1029_p7 = por %p1028_p3, %p1027_p10 }
  0x6a   : > { %p1030_p5 = pnand %p1029_p7, %p1023_p6 }
  0x6c   : > { %1033 = shalt.err (!%p1030_p5)
}
  0x6d   : > { %840 = dma.hbm_to_vmem [thread:$0]  (!%p1507_p8), %s1243_s9, 256, %s1275_s14, %s1227_s13, %s1510_s3, %s1510_s3, %s1509_s2  }
  0x6e   : > { %p1512_p11 = scmp.ne.s32.totalorder %s1504_s8, 0 }
  0x6f   : > { %s1329_s4 = sand.u32 (!%p1512_p11), 1, %s1110_s19   ;;  %p1513_p12 = scmp.ne.s32.totalorder (!%p1512_p11), %s1500_s7, 0 }
  0x70   : > { %301 = sbr.rel (%p1512_p11) target bundleno = 409 (0x199), region = 40  ;;  %s304_s12 = scalar_lea.sflag (!%p1512_p11), [#allocation3], %s1329_s4 }
  0x71   : > { %s795_s24 = smul.u32 (!%p1512_p11), 48, %s1329_s4 }
  0x73   : > { %s1333_s17 = scalar_lea.vmem (!%p1512_p11), [#allocation2], %s795_s24 }
  0x75   : > { %1085 = dma.done.wait (%p1513_p12), %s304_s12, 768  }
  0x76   : > { %1087 = vsyncadd (%p1513_p12), %s304_s12, 4294966528  ;;  %s312_s28 = sand.u32 1, %s1246_s15   ;;  %s772_s13 = sshll.u32 %s1329_s4, 4 }
  0x77   : > { %s313_s9 = scalar_lea.sflag [#allocation7], %s312_s28  ;;  %s1341_s14 = scalar_lea.vmem [#allocation6], %s772_s13 }
  0x78   : > { %1089 = dma.done.wait (%p1513_p12), %s313_s9, 512  }
  0x79   : > { %1091 = vsyncadd (%p1513_p12), %s313_s9, 4294966784  ;;  %s1347_s8 = scalar_lea.vmem [#allocation8], %s772_s13  ;;  %p1514_p8 = scmp.eq.s32.totalorder %s1246_s15, 0 }
  0x7b   : > { %1093 = dma.done.wait (%p1514_p8), [#allocation5], 16   ;;  %p1515_p13 = pmov %p1514_p8 }
  0x7c   : > { %p1516_p2 = pmov %p1514_p8 }
  0x7d   : > { %1095 = vsyncadd (%p1515_p13), [#allocation5], 4294967280 }
  0x7e   : > { %1097 = dma.done.wait (%p1516_p2), [#allocation11], 16   ;;  %p1517_p4 = pmov %p1516_p2 }
  0x80   : > { %1099 = vsyncadd (%p1517_p4), [#allocation11], 4294967280 }
  0x81   : > { %338 = sfence }
  0x82   : > { %v379_v0 = vld [vmem:[%s1333_s17] sm:$0xff]  ;;  %v380_v1 = vld [vmem:[%s1333_s17 + $0x8] sm:$0xff]  ;;  %s393_s15 = sld [smem:[#allocation9 + %s1118_s21]]  ;;  %v777_v32 = vld [vmem:[%s1333_s17 + $0x10] sm:$0xff]  ;;  %v1135_v44 = vmov 0.0   ;;  %vm430_vm12 = vcmask 130048  }
  0x83   : > { %904 = vlog2.f32 %v379_v0  ;;  %v410_v2 = vsub.f32 1.0, %v379_v0  ;;  %v411_v3 = vsub.f32 1.0, %v380_v1  ;;  %v1360_v4 = vld [vmem:[%s1333_s17 + $0x20] sm:$0xff]  ;;  %v1363_v5 = vld [vmem:[%s1333_s17 + $0x28] sm:$0xff]  ;;  %v778_v33 = vld [vmem:[%s1333_s17 + $0x18] sm:$0xff]  ;;  %s394_s7 = sld [smem:[#allocation10 + %s1118_s21]] }
  0x84   : > { %906 = vlog2.f32 %v380_v1  ;;  %v464_v6 = vand.u32 2147483647, %v1360_v4  ;;  %v465_v7 = vand.u32 2147483647, %v1363_v5  ;;  %v1369_v13 = vld [vmem:[%s1341_s14] sm:$0xff]  ;;  %v1372_v15 = vld [vmem:[%s1341_s14 + $0x8] sm:$0xff] }
  0x85   : > { %908 = vlog2.f32 %v410_v2  ;;  %vm391_vm0 = vcmp.gt.f32.partialorder %v1369_v13, 0.5  ;;  %v420_v23 = vsub.f32 1.0, %v1369_v13  ;;  %v389_v24 = vld [vmem:[%s1347_s8] sm:$0xff]  ;;  %v421_v28 = vsub.f32 1.0, %v1372_v15  ;;  %v390_v29 = vld [vmem:[%s1347_s8 + $0x8] sm:$0xff]  ;;  %s776_s26 = sshll.u32 %s1329_s4, 3 }
  0x86   : > { %910 = vlog2.f32 %v411_v3  ;;  %v466_v8 = vsub.f32 0.0, %v464_v6  ;;  %v467_v9 = vsub.f32 0.0, %v465_v7  ;;  %vm392_vm2 = vcmp.gt.f32.partialorder %v1372_v15, 0.5  ;;  %s788_s27 = sshll.u32 %s1118_s21, 7  ;;  %s370_s22 = scalar_lea.vmem [#allocation12], %s776_s26 }
  0x87   : > { %vm524_vm4 = vcmp.gt.f32.partialorder %v389_v24, 0.0  ;;  %vm526_vm5 = vcmp.gt.f32.partialorder %v1369_v13, 0.0  ;;  %vm525_vm7 = vcmp.gt.f32.partialorder %v390_v29, 0.0  ;;  %vm527_vm8 = vcmp.gt.f32.partialorder %v1372_v15, 0.0  ;;  %s606_s29 = sshll.u32 %s370_s22, 4  ;;  %s604_s12 = scalar_lea.hbm %s1476_s5, %s788_s27  ;;  %s607_s29 = int_to_ptr.vmem [resolvable:$true] %s606_s29 }
  0x88   : > { %v468_v10 = vmul.f32 1.442695, %v466_v8  ;;  %v470_v11 = vmul.f32 1.442695, %v467_v9  ;;  %v395_v16 = vstv %s393_s15  ;;  %v534_v39 = vsub.f32 %v777_v32, %v389_v24  ;;  %vm528_vm10 = vmor %vm524_vm4, %vm526_vm5  ;;  %s593_s17 = scalar_lea.sflag [#allocation4], %s1329_s4  ;;  %s1034_s28 = scalar_lea.vmem %s607_s29, 128 }
  0x89   : > { %vm1377_vm1 = vcmp.ge.f32.partialorder %v379_v0, %v395_v16  ;;  %vm397_vm3 = vcmp.ge.f32.partialorder %v380_v1, %v395_v16  ;;  %v535_v40 = vsub.f32 %v778_v33, %v390_v29  ;;  %vm529_vm11 = vmor %vm525_vm7, %vm527_vm8  ;;  %v785_v54 = vsel %vm528_vm10, 1.0, %v1135_v44  ;;  %p1035_p9 = scmp.ne.s32.totalorder %s607_s29, %s1034_s28  ;;  %p1520_p0 = scmp.ne.s32.totalorder %s1501_s6, 0 }
  0x8a   : > { %912 = vpow2.f32 %v468_v10  ;;  %vm398_vm6 = vmor %vm1377_vm1, %vm391_vm0  ;;  %v536_v51 = vand.u32 2147483647, %v534_v39  ;;  %v786_v55 = vsel %vm529_vm11, 1.0, %v1135_v44  ;;  %v482_v1 = vsub.f32 0.0, %v1360_v4  ;;  %s1136_s13 = smov [#allocation12]  }
  0x8b   : > { %914 = vpow2.f32 %v470_v11  ;;  %vm399_vm9 = vmor %vm397_vm3, %vm392_vm2  ;;  %v781_v45 = vsel %vm398_vm6, 1.0, %v1135_v44  ;;  %v537_v52 = vand.u32 2147483647, %v535_v40  ;;  %v483_v2 = vsub.f32 0.0, %v1363_v5  ;;  %p1036_p1 = pnand %p1035_p9, %p1520_p0  ;;  %s1038_s9 = sshll.u32 %s1136_s13, 4  ;;  %s1039_s9 = int_to_ptr.vmem [resolvable:$false] %s1038_s9 }
  0x8c   : > { %v782_v48 = vsel %vm399_vm9, 1.0, %v1135_v44  ;;  %v443_v58 = vsel %vm430_vm12, %v781_v45, 0.0  ;;  %v538_v61 = vmul.f32 %v785_v54, %v536_v51  ;;  %v455_v7 = vstv %s394_s7  ;;  %s1040_s14 = scalar_lea.vmem %s1039_s9, 256  ;;  %p1041_p10 = scmp.lt.s32.totalorder %s607_s29, %s1039_s9 }
  0x8d   : > { %v444_v60 = vsel %vm430_vm12, %v782_v48, 0.0  ;;  %v539_v62 = vmul.f32 %v786_v55, %v537_v52  ;;  %v478_v8 = vmax.f32 %v1360_v4, 0.0  ;;  %v484_v9 = vmax.f32 %v482_v1, 0.0  ;;  %p1037_p6 = pneg %p1036_p1  ;;  %p1042_p3 = scmp.lt.s32.totalorder %s1040_s14, %s1034_s28 }
  0x8e   : > { %v445_v0 = vadd.f32 %v444_v60, %v443_v58  ;;  %v540_v3 = vsel %vm430_vm12, %v538_v61, 0.0  ;;  %vm456_vm13 = vcmp.ge.f32.partialorder %v1360_v4, %v455_v7  ;;  %vm457_vm14 = vcmp.ge.f32.partialorder %v1363_v5, %v455_v7 }
  0x8f   : > { %v541_v6 = vsel %vm430_vm12, %v539_v62, 0.0  ;;  %vm458_vm15 = vmor %vm456_vm13, %vm391_vm0  ;;  %p1043_p7 = por %p1042_p3, %p1041_p10 }
  0x90   : > { %v905_v12 = vpop.eup %904  ;;  %v542_v10 = vadd.f32 %v541_v6, %v540_v3  ;;  %vm459_vm1 = vmor %vm457_vm14, %vm392_vm2  ;;  %v783_v29 = vsel %vm458_vm15, 1.0, %v1135_v44 }
  0x91   : > { %v907_v14 = vpop.eup %906  ;;  %v405_v17 = vmul.f32 0.6931472, %v905_v12  ;;  %v479_v12 = vmax.f32 %v1363_v5, 0.0  ;;  %v784_v32 = vsel %vm459_vm1, 1.0, %v1135_v44  ;;  %v512_v39 = vsel %vm430_vm12, %v783_v29, 0.0  ;;  %p1044_p5 = pnand %p1043_p7, %p1037_p6 }
  0x92   : > { %v909_v18 = vpop.eup %908  ;;  %v407_v19 = vmul.f32 0.6931472, %v907_v14  ;;  %v485_v14 = vmax.f32 %v483_v2, 0.0 }
  0x93   : > { %v911_v20 = vpop.eup %910  ;;  %v408_v21 = vmax.f32 %v405_v17, -100.0  ;;  %v413_v22 = vmul.f32 0.6931472, %v909_v18 }
  0x94   : > { %v409_v26 = vmax.f32 %v407_v19, -100.0  ;;  %v415_v27 = vmul.f32 0.6931472, %v911_v20 }
  0x95   : > { %v416_v30 = vmax.f32 %v413_v22, -100.0  ;;  %v418_v31 = vmul.f32 %v408_v21, %v1369_v13 }
  0x96   : > { %v417_v34 = vmax.f32 %v415_v27, -100.0  ;;  %v419_v35 = vmul.f32 %v409_v26, %v1372_v15 }
  0x97   : > { %v422_v36 = vmul.f32 %v420_v23, %v416_v30  ;;  %v913_v37 = vpop.eup %912 }
  0x98   : > { %v423_v38 = vmul.f32 %v421_v28, %v417_v34  ;;  %v915_v41 = vpop.eup %914  ;;  %v472_v43 = vadd.f32 1.0, %v913_v37 }
  0x99   : > { %v424_v42 = vadd.f32 %v422_v36, %v418_v31  ;;  %v473_v47 = vadd.f32 1.0, %v915_v41  ;;  %v552_v41 = vsel %vm430_vm12, %v785_v54, 0.0 }
  0x9a   : > { %v425_v46 = vadd.f32 %v423_v38, %v419_v35  ;;  %916 = vlog2.f32 %v472_v43 }
  0x9b   : > { %v426_v49 = vsub.f32 0.0, %v424_v42  ;;  %918 = vlog2.f32 %v473_v47 }
  0x9c   : > { %v427_v50 = vsub.f32 0.0, %v425_v46 }
  0x9d   : > { %v428_v53 = vmul.f32 %v781_v45, %v426_v49 }
  0x9e   : > { %v429_v56 = vmul.f32 %v782_v48, %v427_v50 }
  0x9f   : > { %v431_v57 = vsel %vm430_vm12, %v428_v53, 0.0 }
  0xa0   : > { %v432_v59 = vsel %vm430_vm12, %v429_v56, 0.0 }
  0xa1   : > { %v433_v63 = vadd.f32 %v432_v59, %v431_v57 }
  0xa3   : > { %434 = vadd.xlane.f32.xlu0 %v433_v63 }
  0xa7   : > { %446 = vadd.xlane.f32.xlu0 %v445_v0  ;;  %v917_v11 = vpop.eup %916 }
  0xa8   : > { %v919_v16 = vpop.eup %918  ;;  %v475_v17 = vmul.f32 0.6931472, %v917_v11 }
  0xa9   : > { %v477_v18 = vmul.f32 0.6931472, %v919_v16 }
  0xaa   : > { %v480_v19 = vadd.f32 %v478_v8, %v475_v17  ;;  %v486_v20 = vadd.f32 %v484_v9, %v475_v17 }
  0xab   : > { %543 = vadd.xlane.f32.xlu0 %v542_v10  ;;  %v481_v21 = vadd.f32 %v479_v12, %v477_v18  ;;  %v487_v22 = vadd.f32 %v485_v14, %v477_v18 }
  0xac   : > { %v488_v24 = vmin.f32 %v486_v20, 100.0  ;;  %v492_v25 = vmin.f32 %v480_v19, 100.0 }
  0xad   : > { %v489_v26 = vmin.f32 %v487_v22, 100.0  ;;  %v493_v27 = vmin.f32 %v481_v21, 100.0 }
  0xae   : > { %v490_v4 = vmul.f32 %v488_v24, %v1369_v13  ;;  %v494_v5 = vmul.f32 %v492_v25, %v420_v23  ;;  %v513_v13 = vsel %vm430_vm12, %v784_v32, 0.0  ;;  %v564_v25 = vlaneseq }
  0xaf   : > { %v491_v30 = vmul.f32 %v489_v26, %v1372_v15  ;;  %v495_v31 = vmul.f32 %v493_v27, %v421_v28  ;;  %v514_v40 = vadd.f32 %v513_v13, %v512_v39  ;;  %v553_v15 = vsel %vm430_vm12, %v786_v55, 0.0 }
  0xb0   : > { %v496_v33 = vadd.f32 %v494_v5, %v490_v4  ;;  %v554_v28 = vadd.f32 %v553_v15, %v552_v41  ;;  %v565_v26 = vand.u32 127, %v564_v25 }
  0xb1   : > { %v497_v34 = vadd.f32 %v495_v31, %v491_v30 }
  0xb2   : > { %v498_v35 = vmul.f32 %v783_v29, %v496_v33  ;;  %vm566_vm0 = vcmp.eq.s32.totalorder %v565_v26, 0  ;;  %vm569_vm2 = vcmp.eq.s32.totalorder %v565_v26, 1  ;;  %vm573_vm3 = vcmp.eq.s32.totalorder %v565_v26, 2 }
  0xb3   : > { %v499_v36 = vmul.f32 %v784_v32, %v497_v34  ;;  %vm577_vm4 = vcmp.eq.s32.totalorder %v565_v26, 3  ;;  %vm581_vm5 = vcmp.eq.s32.totalorder %v565_v26, 4  ;;  %vm585_vm6 = vcmp.eq.s32.totalorder %v565_v26, 5 }
  0xb4   : > { %v500_v37 = vsel %vm430_vm12, %v498_v35, 0.0 }
  0xb5   : > { %v501_v38 = vsel %vm430_vm12, %v499_v36, 0.0 }
  0xb6   : > { %v502_v23 = vadd.f32 %v501_v38, %v500_v37 }
  0xb8   : > { %503 = vadd.xlane.f32.xlu1 %v502_v23 }
  0xbc   : > { %515 = vadd.xlane.f32.xlu1 %v514_v40 }
  0xc0   : > { %555 = vadd.xlane.f32.xlu1 %v554_v28 }
 0x12c   : > { %v435_v42 = vpop.xlane.xlu0 %434 }
 0x12d   : > { %v436_v43 = vrot.slane %v435_v42, 4 }
 0x12f   : > { %v437_v44 = vadd.f32 %v436_v43, %v435_v42 }
 0x130   : > { %v447_v45 = vpop.xlane.xlu0 %446 }
 0x131   : > { %v438_v46 = vrot.slane %v437_v44, 2  ;;  %v448_v47 = vrot.slane %v447_v45, 4 }
 0x133   : > { %v449_v48 = vadd.f32 %v448_v47, %v447_v45  ;;  %v439_v49 = vadd.f32 %v438_v46, %v437_v44 }
 0x134   : > { %v544_v54 = vpop.xlane.xlu0 %543 }
 0x135   : > { %v450_v50 = vrot.slane %v449_v48, 2  ;;  %v440_v51 = vrot.slane %v439_v49, 1  ;;  %v545_v55 = vrot.slane %v544_v54, 4 }
 0x137   : > { %v441_v52 = vadd.f32 %v440_v51, %v439_v49  ;;  %v451_v53 = vadd.f32 %v450_v50, %v449_v48  ;;  %v546_v59 = vadd.f32 %v545_v55, %v544_v54 }
 0x139   : > { %796 = vpush %v441_v52  ;;  %v452_v56 = vrot.slane %v451_v53, 1  ;;  %v547_v62 = vrot.slane %v546_v59, 2 }
 0x13b   : > { %v453_v57 = vadd.f32 %v452_v56, %v451_v53  ;;  %v548_v6 = vadd.f32 %v547_v62, %v546_v59 }
 0x13d   : > { %798 = vpush %v453_v57  ;;  %v549_v16 = vrot.slane %v548_v6, 1 }
 0x13f   : > { %v550_v21 = vadd.f32 %v549_v16, %v548_v6 }
 0x141   : > { %v504_v58 = vpop.xlane.xlu1 %503 }
 0x142   : > { %v505_v60 = vrot.slane %v504_v58, 4 }
 0x144   : > { %v506_v61 = vadd.f32 %v505_v60, %v504_v58 }
 0x145   : > { %v516_v63 = vpop.xlane.xlu1 %515 }
 0x146   : > { %v507_v0 = vrot.slane %v506_v61, 2  ;;  %v517_v1 = vrot.slane %v516_v63, 4 }
 0x148   : > { %v518_v2 = vadd.f32 %v517_v1, %v516_v63  ;;  %v508_v3 = vadd.f32 %v507_v0, %v506_v61 }
 0x149   : > { %v556_v7 = vpop.xlane.xlu1 %555 }
 0x14a   : > { %v519_v8 = vrot.slane %v518_v2, 2  ;;  %v557_v9 = vrot.slane %v556_v7, 4  ;;  %v509_v10 = vrot.slane %v508_v3, 1 }
 0x14c   : > { %v558_v11 = vadd.f32 %v557_v9, %v556_v7  ;;  %v510_v12 = vadd.f32 %v509_v10, %v508_v3  ;;  %v520_v14 = vadd.f32 %v519_v8, %v518_v2 }
 0x14e   : > { %v559_v17 = vrot.slane %v558_v11, 2  ;;  %800 = vpush %v510_v12  ;;  %v521_v18 = vrot.slane %v520_v14, 1 }
 0x150   : > { %v560_v19 = vadd.f32 %v559_v17, %v558_v11  ;;  %v522_v20 = vadd.f32 %v521_v18, %v520_v14 }
 0x152   : > { %802 = vpush %v522_v20  ;;  %v561_v22 = vrot.slane %v560_v19, 1 }
 0x153   : > { %804 = vpush %v550_v21 }
 0x154   : > { %v562_v24 = vadd.f32 %v561_v22, %v560_v19 }
 0x156   : > { %806 = vpush %v562_v24 }
 0x16a   : > { %s797_s1 = spop %796 }
 0x16b   : > { %v567_v27 = vstv %s797_s1 }
 0x16c   : > { %v568_v5 = vsel %vm566_vm0, %v567_v27, 0.0 }
 0x16e   : > { %s799_s30 = spop %798 }
 0x16f   : > { %v570_v4 = vstv %s799_s30 }
 0x170   : > { %v571_v29 = vsel %vm569_vm2, %v570_v4, 0.0 }
 0x171   : > { %v572_v32 = vadd.f32 %v571_v29, %v568_v5 }
 0x17f   : > { %s801_s11 = spop %800 }
 0x180   : > { %v574_v30 = vstv %s801_s11 }
 0x181   : > { %v575_v31 = vsel %vm573_vm3, %v574_v30, 0.0 }
 0x182   : > { %v576_v33 = vadd.f32 %v575_v31, %v572_v32 }
 0x183   : > { %s803_s16 = spop %802 }
 0x184   : > { %v578_v34 = vstv %s803_s16  ;;  %s805_s2 = spop %804 }
 0x185   : > { %v579_v35 = vsel %vm577_vm4, %v578_v34, 0.0  ;;  %v582_v36 = vstv %s805_s2 }
 0x186   : > { %v580_v37 = vadd.f32 %v579_v35, %v576_v33  ;;  %v583_v38 = vsel %vm581_vm5, %v582_v36, 0.0 }
 0x187   : > { %s807_s3 = spop %806 }
 0x188   : > { %v584_v39 = vadd.f32 %v583_v38, %v580_v37  ;;  %v586_v13 = vstv %s807_s3 }
 0x189   : > { %v587_v23 = vsel %vm585_vm6, %v586_v13, 0.0 }
 0x18a   : > { %v588_v40 = vadd.f32 %v587_v23, %v584_v39 }
 0x18c   : > { %591 = vst [vmem:[%s370_s22] sm:$0xff] %v588_v40 }
 0x18d   : > { %1047 = shalt.err (!%p1044_p5)
}
 0x18e   : > { %s1048_s21 = scalar_lea.hbm %s604_s12, 128  ;;  %s1052_s15 = scalar_lea.hbm %s1476_s5, 256 }
 0x18f   : > { %p1049_p11 = scmp.ne.s32.totalorder %s604_s12, %s1048_s21  ;;  %p1053_p13 = scmp.lt.s32.totalorder %s604_s12, %s1476_s5 }
 0x190   : > { %p1054_p2 = scmp.lt.s32.totalorder %s1052_s15, %s1048_s21 }
 0x191   : > { %p1050_p12 = pnand %p1049_p11, %p1520_p0 }
 0x192   : > { %p1055_p4 = por %p1054_p2, %p1053_p13 }
 0x193   : > { %p1051_p8 = pneg %p1050_p12 }
 0x195   : > { %p1056_p9 = pnand %p1055_p4, %p1051_p8 }
 0x197   : > { %1059 = shalt.err (!%p1056_p9)
}
 0x198   : > { %822 = dma.vmem_to_hbm [thread:$0]  (%p1520_p0), %s607_s29, 128, %s604_s12, %s593_s17  }
 0x199 PF: > { %s618_s30 = sand.u32 1, %s1106_s18   ;;  %p1521_p1 = scmp.ne.s32.totalorder %s1502_s10, 0 }
 0x19a   : > { %p1522_p6 = scmp.ge.s32.totalorder %s1126_s23, 2  ;;  %s619_s11 = scalar_lea.sflag [#allocation4], %s618_s30 }
 0x19c   : > { %p842_p10 = pnand %p1522_p6, %p1521_p1 }
 0x19e   : > { %p843_p3 = pneg %p842_p10 }
 0x1a0   : > { %1101 = dma.done.wait (%p843_p3), %s619_s11, 128  }
 0x1a1   : > { %1103 = vsyncadd (%p843_p3), %s619_s11, 4294967168  ;;  %s26_s23 = sadd.s32 1, %s1126_s23   ;;  %s1523_s16 = sld [smem:[#allocation20_spill]] }
 0x1a2   : > { %p23_p7 = scmp.ge.s32.totalorder %s26_s23, 4   ;;  %s1524_s21 = sld [smem:[#allocation18_spill]] }
 0x1a3   : > { %s1525_s22 = sld [smem:[#allocation19_spill]]  ;;  %s1526_s18 = smov %s1110_s19 }
 0x1a4   : > { %s1527_s19 = smov %s1114_s20  ;;  %25 = sbr.rel (!%p23_p7) target bundleno = 15 (0xf), region = 124 }
 0x1a7   : > { %s1528_s20 = smov %s1523_s16 }
 0x1a9   :  { %624 = vsyncpa [#allocation3], 1 }
 0x1aa   :  { %626 = vsyncpa [#allocation3 + $0x1], 1 }
 0x1ab   :  { %627 = vsyncpa [#allocation7], 1 }
 0x1ac   :  { %629 = vsyncpa [#allocation7 + $0x1], 1 }
 0x1ad   :  { %630 = vsyncpa [#allocation4], 1 }
 0x1ae   :  { %632 = vsyncpa [#allocation4 + $0x1], 1 }
 0x1af   :  { %633 = vsyncpa [#allocation5], 1 }
 0x1b0   :  { %635 = vsyncpa [#allocation5 + $0x1], 1 }
 0x1b1   :  { %636 = vsyncpa [#allocation11], 1 }

</bundles_post_ra>
